<compile_context>
chip_gen: v7x
topology: tpu7x:2x2x1
jax: 0.10.0
libtpu: 0.0.40
codegen_flags: <defaults>
</compile_context>

<pallas_src>
import functools

import jax
import jax.numpy as jnp
from jax.experimental import pallas as pl
from jax.experimental.pallas import tpu as pltpu


def _round_up(n, m):
    return ((n + m - 1) // m) * m


def _recip(x):
    """EUP approx reciprocal + one Newton step (~f32 accuracy, off the VALU path)."""
    r = pl.reciprocal(x, approx=True)
    return r * (2.0 - x * r)


def dec_kernel(x_ref, w_ref, b_ref, ct_ref, c2_ref, q_ref, *, inv_alpha, power):
    # Encode: h = x @ W + b  (stand-in for autoencoder.encode).
    # Cast the streamed x tile to the MXU compute dtype here (not in the
    # wrapper), accumulate in f32.
    h = jnp.dot(x_ref[...].astype(w_ref.dtype), w_ref[...],
                preferred_element_type=jnp.float32)
    h = h + b_ref[...]                                           # (tb, H) f32

    # Expanded pairwise squared distance with the scalars folded into the
    # precomputed constants:
    #   t = ||h||^2/alpha + (||c||^2/alpha | poison) + h @ (-2 c^T / alpha)
    # ct_ref / c2_ref are f32, so the distance contraction stays f32 even when
    # the encoder matmul runs in bf16.
    h2 = jnp.sum(h * h, axis=1, keepdims=True)                   # (tb, 1)
    if inv_alpha != 1.0:
        h2 = h2 * inv_alpha
    hc = jnp.dot(h, ct_ref[...], preferred_element_type=jnp.float32)  # (tb, K_pad)
    t = jnp.maximum(h2 + c2_ref[...] + hc, 0.0)                  # clamp cancellation

    # Student-t kernel (ClusteringLayer.forward).  Reciprocal BEFORE the power
    # so the poisoned padded lanes become ~0 instead of overflowing.
    numerator = _recip(1.0 + t)
    if power != 1.0:
        numerator = numerator ** power

    denom = jnp.sum(numerator, axis=1, keepdims=True)            # (tb, 1)
    q_ref[...] = (numerator * _recip(denom)).astype(q_ref.dtype)


def _working_set_bytes(tb, D, H, K_pad, x_itemsize, w_itemsize, out_itemsize):
    streamed = 2 * tb * (D * x_itemsize + K_pad * out_itemsize)   # double-buffered x / q tiles
    resident = 2 * (D * H * w_itemsize + 4 * H + 4 * H * K_pad + 4 * K_pad)
    scratch = 4 * tb * (H + 2 * K_pad)                            # h, hc/numerator temporaries
    return streamed + resident + scratch


def dec_forward(x, w_enc, b_enc, centers, *, alpha=1.0, tb=None,
                compute_dtype=jnp.float32, out_dtype=jnp.float32, trim=True):
    """DEC forward: q = student_t(encode(x), centers).

    Returns (B, K) in out_dtype (or the padded (B, K_pad) slab if trim=False,
    which avoids an extra HBM read+write pass when the consumer can slice)."""
    B, D = x.shape
    Dw, H = w_enc.shape
    K, Hc = centers.shape
    assert Dw == D and Hc == H

    # Lane-dense cluster axis: pad K up to a multiple of 128 (no benefit from
    # padding further — this kernel is HBM/overhead-bound, not MXU-bound).
    K_pad = max(128, _round_up(K, 128))

    # Batch tile: multiple of 8 (sublane).  Default: at least 4 grid steps when
    # the batch allows (v7x megacore sharding + DMA/compute overlap), large
    # tiles for big batches to amortize the ~0.35 us/step overhead.
    if tb is None:
        tb = _round_up(pl.cdiv(B, 4), 8)
        tb = max(8, min(tb, 1024))
    else:
        tb = max(8, _round_up(tb, 8))
    tb = min(tb, _round_up(B, 8))

    x_itemsize = jnp.dtype(x.dtype).itemsize
    w_itemsize = jnp.dtype(compute_dtype).itemsize
    out_itemsize = jnp.dtype(out_dtype).itemsize

    # Shrink tb until the working set fits a conservative budget that also
    # works on v7x (64 MiB physical VMEM) and v5e's scoped default.
    VMEM_BUDGET = 40 << 20
    while tb > 8 and _working_set_bytes(tb, D, H, K_pad, x_itemsize,
                                        w_itemsize, out_itemsize) > VMEM_BUDGET:
        tb = max(8, _round_up(tb // 2, 8))

    grid = (pl.cdiv(B, tb),)

    ws = _working_set_bytes(tb, D, H, K_pad, x_itemsize, w_itemsize, out_itemsize)
    vmem_limit = int(min(max(2 * ws + (4 << 20), 32 << 20), 56 << 20))

    inv_alpha = 1.0 / float(alpha)
    power = (float(alpha) + 1.0) / 2.0

    # Hoisted constants (built once, tiny, resident in VMEM):
    #   cT = -2/alpha * centers^T, zero-padded on the lane axis
    #   c2 =  1/alpha * |c|^2, padded lanes poisoned so they vanish after recip
    cT = jnp.zeros((H, K_pad), dtype=jnp.float32)
    cT = cT.at[:, :K].set(centers.T.astype(jnp.float32) * (-2.0 * inv_alpha))
    c2 = jnp.full((1, K_pad), 1e30, dtype=jnp.float32)
    c2 = c2.at[:, :K].set(
        jnp.sum(centers.astype(jnp.float32) ** 2, axis=1)[None, :] * inv_alpha)

    # Encoder weights in the MXU compute dtype (bf16 halves resident/streamed
    # bytes and is valid on v5e/v6e/v7x — accumulation stays f32); bias f32.
    w = w_enc.astype(compute_dtype)
    b = b_enc.astype(jnp.float32).reshape(1, H)

    kernel = functools.partial(dec_kernel, inv_alpha=inv_alpha, power=power)

    n_rows = grid[0] * tb
    cost = pl.CostEstimate(
        flops=2 * n_rows * D * H + 2 * n_rows * H * K_pad + 10 * n_rows * K_pad,
        transcendentals=n_rows * K_pad + n_rows,
        bytes_accessed=(B * D * x_itemsize              # streamed x (no wrapper copy)
                        + D * H * w_itemsize            # resident W
                        + 4 * (H + H * K_pad + K_pad)   # b, cT, |c|^2
                        + n_rows * K_pad * out_itemsize),  # q out
    )

    q_pad = pl.pallas_call(
        kernel,
        out_shape=jax.ShapeDtypeStruct((B, K_pad), out_dtype),
        grid_spec=pltpu.PrefetchScalarGridSpec(
            num_scalar_prefetch=0,
            grid=grid,
            in_specs=[
                pl.BlockSpec((tb, D), lambda i: (i, 0)),      # streamed x tile
                pl.BlockSpec((D, H), lambda i: (0, 0)),       # resident encoder W
                pl.BlockSpec((1, H), lambda i: (0, 0)),       # resident encoder b
                pl.BlockSpec((H, K_pad), lambda i: (0, 0)),   # resident -2/alpha * c^T
                pl.BlockSpec((1, K_pad), lambda i: (0, 0)),   # resident |c|^2/alpha (poisoned pad)
            ],
            out_specs=pl.BlockSpec((tb, K_pad), lambda i: (i, 0)),
        ),
        compiler_params=pltpu.CompilerParams(
            dimension_semantics=("parallel",),    # megacore-shardable batch axis
            vmem_limit_bytes=vmem_limit),
        cost_estimate=cost,
    )(x, w, b, cT, c2)

    if trim:
        return q_pad[:, :K]
    return q_pad


def dec_reference(x, w_enc, b_enc, centers, alpha=1.0):
    """Pure-JAX reference mirroring the PyTorch module exactly."""
    h = x @ w_enc + b_enc                                       # autoencoder.encode
    diff = h[:, None, :] - centers[None, :, :]                  # (B, K, H)
    norm_sq = jnp.sum(diff * diff, axis=2)                      # (B, K)
    numerator = 1.0 / (1.0 + norm_sq / alpha)
    numerator = numerator ** ((alpha + 1.0) / 2.0)
    return numerator / jnp.sum(numerator, axis=1, keepdims=True)


if __name__ == "__main__":
    # Small shapes consistent with DEC: batch=64, input features=64,
    # hidden (latent)=32, n_clusters=10, alpha=1.0.  Default tb -> 16 (grid=4).
    B, D, H, K = 64, 64, 32, 10
    alpha = 1.0

    key = jax.random.PRNGKey(0)
    kx, kw, kb, kc = jax.random.split(key, 4)

    x = jax.random.normal(kx, (B, D), dtype=jnp.float32)

    # TODO(synk): DEC takes an externally supplied autoencoder; modeled here as a
    # single deterministic linear encoder (x @ W + b) since none is defined.
    w_enc = jax.random.normal(kw, (D, H), dtype=jnp.float32) * (1.0 / jnp.sqrt(D))
    b_enc = jax.random.normal(kb, (1, H), dtype=jnp.float32) * 0.01

    # nn.init.xavier_uniform_ on (n_clusters, hidden): U(-a, a), a = sqrt(6/(K+H))
    bound = (6.0 / (K + H)) ** 0.5
    centers = jax.random.uniform(kc, (K, H), dtype=jnp.float32,
                                 minval=-bound, maxval=bound)

    q_ref = dec_reference(x, w_enc, b_enc, centers, alpha=alpha)

    # f32 matmul path: tight tolerance against the reference.
    q = dec_forward(x, w_enc, b_enc, centers, alpha=alpha,
                    compute_dtype=jnp.float32)
    q = jax.block_until_ready(q)
    assert q.shape == (B, K)
    assert jnp.allclose(jnp.sum(q, axis=1), 1.0, atol=1e-5)
    assert jnp.allclose(q, q_ref, atol=1e-5, rtol=1e-5)

    # bf16 encoder-matmul path (perf mode on v5e/v6e/v7x): distance contraction
    # stays f32, so only the encoding itself is low-precision.
    q_bf16 = dec_forward(x, w_enc, b_enc, centers, alpha=alpha,
                         compute_dtype=jnp.bfloat16)
    q_bf16 = jax.block_until_ready(q_bf16)
    assert q_bf16.shape == (B, K)
    assert jnp.allclose(jnp.sum(q_bf16, axis=1), 1.0, atol=1e-3)
    assert jnp.allclose(q_bf16, q_ref, atol=5e-2, rtol=5e-2)

    print("KERNEL_OK")
</pallas_src>

<mosaic_0001>
module attributes {stable_mosaic.version = 11 : i64} {
  func.func @dec_kernel(%arg0: i32, %arg1: memref<16x64xf32, #tpu.memory_space<vmem>>, %arg2: memref<64x32xf32, #tpu.memory_space<vmem>>, %arg3: memref<1x32xf32, #tpu.memory_space<vmem>>, %arg4: memref<32x128xf32, #tpu.memory_space<vmem>>, %arg5: memref<1x128xf32, #tpu.memory_space<vmem>>, %arg6: memref<16x128xf32, #tpu.memory_space<vmem>>) attributes {dimension_semantics = [#tpu.dimension_semantics<parallel>], iteration_bounds = array<i64: 4>, scalar_prefetch = 0 : i64, scratch_operands = 0 : i64, tpu.core_type = #tpu.core_type<tc>, window_params = [{transform_indices = @transform_0, window_bounds = array<i64: 16, 64>}, {pipeline_mode = #tpu.pipeline_mode<synchronous>, transform_indices = @transform_1, window_bounds = array<i64: 64, 32>}, {pipeline_mode = #tpu.pipeline_mode<synchronous>, transform_indices = @transform_2, window_bounds = array<i64: 1, 32>}, {pipeline_mode = #tpu.pipeline_mode<synchronous>, transform_indices = @transform_3, window_bounds = array<i64: 32, 128>}, {pipeline_mode = #tpu.pipeline_mode<synchronous>, transform_indices = @transform_4, window_bounds = array<i64: 1, 128>}, {transform_indices = @transform_5, window_bounds = array<i64: 16, 128>}]} {
    %c0 = arith.constant 0 : index
    %c0_0 = arith.constant 0 : index
    %0 = vector.load %arg1[%c0, %c0_0] : memref<16x64xf32, #tpu.memory_space<vmem>>, vector<16x64xf32>
    %c0_1 = arith.constant 0 : index
    %c0_2 = arith.constant 0 : index
    %1 = vector.load %arg2[%c0_1, %c0_2] : memref<64x32xf32, #tpu.memory_space<vmem>>, vector<64x32xf32>
    %cst = arith.constant dense<0.000000e+00> : vector<16x32xf32>
    %2 = tpu.matmul %0, %1, %cst {dimension_numbers = #tpu.dot_dimension_numbers<[1], [0], [0], [1], [0, 0, 1, 1], [], []>} : vector<16x64xf32>, vector<64x32xf32>, vector<16x32xf32> -> vector<16x32xf32>
    %c0_3 = arith.constant 0 : index
    %c0_4 = arith.constant 0 : index
    %3 = vector.load %arg3[%c0_3, %c0_4] : memref<1x32xf32, #tpu.memory_space<vmem>>, vector<1x32xf32>
    %4 = vector.broadcast %3 : vector<1x32xf32> to vector<16x32xf32>
    %5 = arith.addf %2, %4 : vector<16x32xf32>
    %6 = arith.mulf %5, %5 : vector<16x32xf32>
    %cst_5 = arith.constant dense<0.000000e+00> : vector<16xf32>
    %7 = vector.multi_reduction <add>, %6, %cst_5 [1] : vector<16x32xf32> to vector<16xf32>
    %8 = vector.shape_cast %7 : vector<16xf32> to vector<16x1xf32>
    %c0_6 = arith.constant 0 : index
    %c0_7 = arith.constant 0 : index
    %9 = vector.load %arg4[%c0_6, %c0_7] : memref<32x128xf32, #tpu.memory_space<vmem>>, vector<32x128xf32>
    %cst_8 = arith.constant dense<0.000000e+00> : vector<16x128xf32>
    %10 = tpu.matmul %5, %9, %cst_8 {dimension_numbers = #tpu.dot_dimension_numbers<[1], [0], [0], [1], [0, 0, 1, 1], [], []>} : vector<16x32xf32>, vector<32x128xf32>, vector<16x128xf32> -> vector<16x128xf32>
    %c0_9 = arith.constant 0 : index
    %c0_10 = arith.constant 0 : index
    %11 = vector.load %arg5[%c0_9, %c0_10] : memref<1x128xf32, #tpu.memory_space<vmem>>, vector<1x128xf32>
    %12 = vector.broadcast %8 : vector<16x1xf32> to vector<16x128xf32>
    %13 = vector.broadcast %11 : vector<1x128xf32> to vector<16x128xf32>
    %14 = arith.addf %12, %13 : vector<16x128xf32>
    %15 = arith.addf %14, %10 : vector<16x128xf32>
    %cst_11 = arith.constant 0.000000e+00 : f32
    %16 = vector.broadcast %cst_11 : f32 to vector<16x128xf32>
    %17 = arith.maximumf %15, %16 : vector<16x128xf32>
    %cst_12 = arith.constant 1.000000e+00 : f32
    %18 = vector.broadcast %cst_12 : f32 to vector<16x128xf32>
    %19 = arith.addf %18, %17 : vector<16x128xf32>
    %20 = tpu.reciprocal %19 {approx = true} : vector<16x128xf32> -> vector<16x128xf32>
    %21 = arith.mulf %19, %20 : vector<16x128xf32>
    %cst_13 = arith.constant 2.000000e+00 : f32
    %22 = vector.broadcast %cst_13 : f32 to vector<16x128xf32>
    %23 = arith.subf %22, %21 : vector<16x128xf32>
    %24 = arith.mulf %20, %23 : vector<16x128xf32>
    %cst_14 = arith.constant dense<0.000000e+00> : vector<16xf32>
    %25 = vector.multi_reduction <add>, %24, %cst_14 [1] : vector<16x128xf32> to vector<16xf32>
    %26 = vector.shape_cast %25 : vector<16xf32> to vector<16x1xf32>
    %27 = tpu.reciprocal %26 {approx = true} : vector<16x1xf32> -> vector<16x1xf32>
    %28 = arith.mulf %26, %27 : vector<16x1xf32>
    %cst_15 = arith.constant 2.000000e+00 : f32
    %29 = vector.broadcast %cst_15 : f32 to vector<16x1xf32>
    %30 = arith.subf %29, %28 : vector<16x1xf32>
    %31 = arith.mulf %27, %30 : vector<16x1xf32>
    %32 = vector.broadcast %31 : vector<16x1xf32> to vector<16x128xf32>
    %33 = arith.mulf %24, %32 : vector<16x128xf32>
    %c0_16 = arith.constant 0 : index
    %c0_17 = arith.constant 0 : index
    %34 = vector.load %arg6[%c0_16, %c0_17] : memref<16x128xf32, #tpu.memory_space<vmem>>, vector<16x128xf32>
    tpu.vector_store %arg6[%c0_16, %c0_17], %33 {strides = array<i32>} : memref<16x128xf32, #tpu.memory_space<vmem>>, vector<16x128xf32>,
    return
  }
  func.func @transform_0(%arg0: i32) -> (i32, i32) {
    %c0_i32 = arith.constant 0 : i32
    %c0_i32_0 = arith.constant 0 : i32
    return %arg0, %c0_i32 : i32, i32
  }
  func.func @transform_1(%arg0: i32) -> (i32, i32) {
    %c0_i32 = arith.constant 0 : i32
    %c0_i32_0 = arith.constant 0 : i32
    %c0_i32_1 = arith.constant 0 : i32
    return %c0_i32, %c0_i32_0 : i32, i32
  }
  func.func @transform_2(%arg0: i32) -> (i32, i32) {
    %c0_i32 = arith.constant 0 : i32
    %c0_i32_0 = arith.constant 0 : i32
    %c0_i32_1 = arith.constant 0 : i32
    return %c0_i32, %c0_i32_0 : i32, i32
  }
  func.func @transform_3(%arg0: i32) -> (i32, i32) {
    %c0_i32 = arith.constant 0 : i32
    %c0_i32_0 = arith.constant 0 : i32
    %c0_i32_1 = arith.constant 0 : i32
    return %c0_i32, %c0_i32_0 : i32, i32
  }
  func.func @transform_4(%arg0: i32) -> (i32, i32) {
    %c0_i32 = arith.constant 0 : i32
    %c0_i32_0 = arith.constant 0 : i32
    %c0_i32_1 = arith.constant 0 : i32
    return %c0_i32, %c0_i32_0 : i32, i32
  }
  func.func @transform_5(%arg0: i32) -> (i32, i32) {
    %c0_i32 = arith.constant 0 : i32
    %c0_i32_0 = arith.constant 0 : i32
    return %arg0, %c0_i32 : i32, i32
  }
}

</mosaic_0001>

<bundles_post_ra>
// kernel: tpu_custom_call.1
= control target key start
LH: loop header
LB: loop body
LE: loop exit
PB: predicated region body
PF: predicated region fallthrough
CT: control target
= control target key end

     0   :  { %10 = vsyncpa [#allocation3], 0  ;;  %s913_s0 = inlined_call_operand.vmem [shape: f32[64,64], index: 0, kind: input, shape index: {}]   ;;  %s914_s1 = inlined_call_operand.vmem [shape: f32[64,32], index: 1, kind: input, shape index: {}]   ;;  %s915_s2 = inlined_call_operand.vmem [shape: f32[1,32], index: 2, kind: input, shape index: {}]   ;;  %s916_s3 = inlined_call_operand.vmem [shape: f32[32,128], index: 3, kind: input, shape index: {}]   ;;  %s917_s4 = inlined_call_operand.vmem [shape: f32[1,128], index: 4, kind: input, shape index: {}]   ;;  %s918_s5 = inlined_call_operand.hbm [shape: f32[64,128], index: 5, kind: output, shape index: {}]  }
   0x1   :  { %12 = vsyncpa [#allocation3 + $0x1], 0  ;;  %s769_s18 = smov 0   ;;  %s771_s19 = smov 0  }
   0x2   :  { %s773_s20 = smov 0   ;;  %s775_s21 = smov 0  }
   0x3 LB: > { %s790_s22 = sadd.s32 4294967295, %s734_s21   ;;  %s534_s23 = sadd.s32 4294967294, %s734_s21   ;;  %s734_s21 = sphi %s775_s21, %s924_s21   ;;  %s730_s20 = sphi %s773_s20, %s923_s20   ;;  %s726_s19 = sphi %s771_s19, %s922_s19   ;;  %s722_s18 = sphi %s769_s18, %s921_s18  }
   0x4   : > { %s794_s24 = sadd.s32 1, %s734_s21   ;;  %s135_s25 = sadd.s32 1, %s730_s20 }
   0x5   : > { %s132_s26 = ssub.s32 %s734_s21, %s794_s24  ;;  %p145_p0 = scmp.ne.s32.totalorder %s730_s20, %s726_s19 }
   0x6   : > { %p133_p1 = scmp.eq.s32.totalorder %s132_s26, 0  ;;  %p146_p2 = scmp.eq.s32.totalorder %s790_s22, 3 }
   0x7   : > { %p151_p3 = scmp.ne.s32.totalorder %s726_s19, %s722_s18  ;;  %p152_p4 = scmp.eq.s32.totalorder %s534_s23, 3 }
   0x8   : > { %s805_s27 = scalar_select %p133_p1, %s730_s20, %s135_s25  }
   0x9   : > { %p807_p5 = por %p146_p2, %p145_p0  ;;  %p811_p6 = por %p152_p4, %p151_p3 }
   0xa   : > { %p537_p7 = scmp.ge.s32.totalorder %s734_s21, 1  ;;  %p191_p8 = scmp.lt.s32.totalorder %s734_s21, 5 }
   0xc   : > { %p192_p9 = pnand %p537_p7, %p191_p8 }
   0xd   : > { %v228_v0 = vld [vmem:[%s914_s1] sm:$0xff] (!%p192_p9)  ;;  %v229_v1 = vld [vmem:[%s914_s1 + $0x8] sm:$0xff] (!%p192_p9)  ;;  %v230_v2 = vld [vmem:[%s914_s1 + $0x10] sm:$0xff] (!%p192_p9)  ;;  %s539_s11 = sshll.u32 (!%p192_p9), %s790_s22, 1  ;;  %vm243_vm0 = vcmask (!%p192_p9), 523264   ;;  %vm327_vm1 = vcmask (!%p192_p9), 261120  }
   0xe   : > { %195 = sbr.rel (%p192_p9) target bundleno = 664 (0x298), region = 40  ;;  %v599_v3 = vpack.c.bf16 (!%p192_p9), %v229_v1, %v228_v0  ;;  %v231_v4 = vld [vmem:[%s914_s1 + $0x18] sm:$0xff] (!%p192_p9)  ;;  %p220_p10 = scmp.lt.s32.totalorder (!%p192_p9), %s539_s11, 7  ;;  %v232_v6 = vld [vmem:[%s914_s1 + $0x20] sm:$0xff] (!%p192_p9)  ;;  %v233_v7 = vld [vmem:[%s914_s1 + $0x28] sm:$0xff] (!%p192_p9) }
   0xf   : > { %v603_v5 = vpack.c.bf16 (!%p192_p9), %v231_v4, %v230_v2  ;;  %v334_v8 = vld [vmem:[%s916_s3] sm:$0xff] (!%p192_p9)  ;;  %v335_v9 = vld [vmem:[%s916_s3 + $0x8] sm:$0xff] (!%p192_p9)  ;;  %v607_v11 = vpack.c.bf16 (!%p192_p9), %v233_v7, %v232_v6  ;;  %v234_v12 = vld [vmem:[%s914_s1 + $0x30] sm:$0xff] (!%p192_p9)  ;;  %s552_s8 = sshll.u32 (!%p192_p9), %s790_s22, 8  ;;  %s736_s22 = smov (!%p192_p9), [#allocation2]  }
  0x10   : > { %600 = vmatprep.subr.bf16.mxu0 (!%p192_p9), %v599_v3  ;;  %v615_v10 = vpack.c.bf16 (!%p192_p9), %v335_v9, %v334_v8  ;;  %v235_v13 = vld [vmem:[%s914_s1 + $0x38] sm:$0xff] (!%p192_p9)  ;;  %v336_v17 = vld [vmem:[%s916_s3 + $0x10] sm:$0xff] (!%p192_p9)  ;;  %v541_v20 = vld [vmem:[%s915_s2] ss:$0 sm:$0xff] (!%p192_p9)  ;;  %s676_s16 = sshll.u32 (!%p192_p9), %s736_s22, 4  ;;  %s677_s16 = int_to_ptr.vmem [resolvable:$false] %s676_s16 }
  0x11   : > { %602 = vmatpush3.bf16.msra.mxu0 (!%p192_p9), %v599_v3  ;;  %v611_v15 = vpack.c.bf16 (!%p192_p9), %v235_v13, %v234_v12  ;;  %v337_v18 = vld [vmem:[%s916_s3 + $0x18] sm:$0xff] (!%p192_p9)  ;;  %v546_v31 = vld [vmem:[%s917_s4] ss:$0 sm:$0xff] (!%p192_p9)  ;;  %s678_s17 = scalar_lea.vmem (!%p192_p9), %s677_s16, 512 }
  0x12   : > { %604 = vmatprep.subr.bf16.mxu0 (!%p192_p9), %v603_v5  ;;  %616 = vmatprep.subr.bf16.mxu1 (!%p192_p9), %v615_v10  ;;  %v619_v19 = vpack.c.bf16 (!%p192_p9), %v337_v18, %v336_v17 }
  0x13   : > { %618 = vmatpush3.bf16.msra.mxu1 (!%p192_p9), %v615_v10 }
  0x14   : > { %620 = vmatprep.subr.bf16.mxu1 (!%p192_p9), %v619_v19 }
  0x15   : > { %s926_s11 = smov (!%p220_p10, %s539_s11), 7  ;;  %606 = vmatpush3.bf16.msra.mxu0 %v603_v5 }
  0x16   : > { %s540_s6 = sshll.u32 %s926_s11, 3  ;;  %608 = vmatprep.subr.bf16.mxu0 %v607_v11 }
  0x17   : > { %s223_s14 = scalar_lea.vmem %s913_s0, %s540_s6  ;;  %622 = vmatpush3.bf16.msra.mxu1 %v619_v19  ;;  %s216_s6 = sand.u32 1, %s726_s19  }
  0x18   : > { %v226_v14 = vld [vmem:[%s223_s14] sm:$0xff]  ;;  %v227_v16 = vld [vmem:[%s223_s14 + $0x8] sm:$0xff]  ;;  %s538_s7 = sshll.u32 %s216_s6, 4  ;;  %s868_s14 = scalar_lea.hbm %s918_s5, %s552_s8 }
  0x19   : > { %585 = vmatprep.mubr.msk.f32.mxu0 %vm243_vm0, %v226_v14  ;;  %610 = vmatpush3.bf16.msra.mxu0 %v607_v11  ;;  %s218_s9 = scalar_lea.vmem [#allocation2], %s538_s7  ;;  %s872_s11 = scalar_lea.sflag [#allocation3], %s216_s6 }
  0x1a   : > { %612 = vmatprep.subr.bf16.mxu0 %v611_v15  ;;  %s472_s10 = sshll.u32 %s218_s9, 4  ;;  %s870_s10 = int_to_ptr.vmem [resolvable:$true] %s472_s10 }
  0x1b   : > { %s672_s15 = scalar_lea.vmem %s870_s10, 256  ;;  %p679_p0 = scmp.lt.s32.totalorder %s870_s10, %s677_s16 }
  0x1c   : > { %p673_p11 = scmp.ne.s32.totalorder %s870_s10, %s672_s15  ;;  %p680_p1 = scmp.lt.s32.totalorder %s678_s17, %s672_s15 }
  0x1d   : > { %614 = vmatpush3.bf16.msra.mxu0 %v611_v15 }
  0x1e   : > { %p674_p12 = pnand %p673_p11, %p807_p5  ;;  %p681_p2 = por %p680_p1, %p679_p0 }
  0x20   : > { %586 = vmatmul.mubr.msk.f32.vlgmr.msra.gmra.mrb[0].mxu0 %vm243_vm0, %v227_v16  ;;  %p675_p13 = pneg %p674_p12 }
  0x22   : > { %p682_p3 = pnand %p681_p2, %p675_p13 }
  0xf3   : > { %v587_v21 = vpop.f32.mrb[0].mxu0 }
  0xf4   : > { %v316_v22 = vpop.f32.mrb[1].mxu0  ;;  %v322_v23 = vadd.f32 %v587_v21, %v541_v20 }
  0xf5   : > { %v317_v24 = vadd.f32 %v541_v20, %v316_v22 }
  0xf6   : > { %v326_v27 = vmul.f32 %v322_v23, %v322_v23 }
  0xf7   : > { %596 = vmatprep.mubr.msk.f32.mxu1 %vm327_vm1, %v317_v24  ;;  %v325_v25 = vmul.f32 %v317_v24, %v317_v24 }
  0xf8   : > { %597 = vmatmul.mubr.msk.f32.vlgmr.msra.gmra.mrb[0].mxu1 %vm327_vm1, %v322_v23  ;;  %v331_v28 = vsel %vm327_vm1, %v326_v27, 0.0 }
  0xf9   : > { %v328_v26 = vsel %vm327_vm1, %v325_v25, 0.0 }
  0xfa   : > { %329 = vadd.xlane.f32.xlu0 %v328_v26 }
  0xfe   : > { %332 = vadd.xlane.f32.xlu0 %v331_v28 }
 0x187   : > { %v330_v29 = vpop.xlane.xlu0 %329 }
 0x188   : > { %v426_v33 = vadd.f32 %v546_v31, %v330_v29 }
 0x18b   : > { %v333_v30 = vpop.xlane.xlu0 %332 }
 0x18c   : > { %v427_v32 = vadd.f32 %v546_v31, %v333_v30 }
 0x1cb   : > { %v598_v34 = vpop.f32.mrb[0].mxu1 }
 0x1cc   : > { %v429_v35 = vadd.f32 %v598_v34, %v427_v32  ;;  %v410_v36 = vpop.f32.mrb[1].mxu1 }
 0x1cd   : > { %v428_v37 = vadd.f32 %v426_v33, %v410_v36 }
 0x1ce   : > { %v431_v38 = vmax.f32 %v429_v35, 0.0 }
 0x1cf   : > { %v430_v39 = vmax.f32 %v428_v37, 0.0 }
 0x1d0   : > { %v433_v40 = vadd.f32 1.0, %v431_v38 }
 0x1d1   : > { %v432_v41 = vadd.f32 1.0, %v430_v39 }
 0x1d2   : > { %664 = vrcp.f32 %v433_v40 }
 0x1d3   : > { %666 = vrcp.f32 %v432_v41 }
 0x1dc   : > { %v665_v42 = vpop.eup %664 }
 0x1dd   : > { %v667_v43 = vpop.eup %666  ;;  %v437_v44 = vmul.f32 %v665_v42, %v433_v40 }
 0x1de   : > { %v436_v45 = vmul.f32 %v667_v43, %v432_v41 }
 0x1df   : > { %v439_v48 = vsub.f32 2.0, %v437_v44 }
 0x1e0   : > { %v438_v46 = vsub.f32 2.0, %v436_v45 }
 0x1e1   : > { %v441_v49 = vmul.f32 %v665_v42, %v439_v48 }
 0x1e2   : > { %v440_v47 = vmul.f32 %v667_v43, %v438_v46 }
 0x1e4   : > { %442 = vadd.xlane.f32.xlu1 %v440_v47 }
 0x1e8   : > { %444 = vadd.xlane.f32.xlu1 %v441_v49 }
 0x271   : > { %v443_v50 = vpop.xlane.xlu1 %442 }
 0x272   : > { %668 = vrcp.f32 %v443_v50 }
 0x275   : > { %v445_v51 = vpop.xlane.xlu1 %444 }
 0x276   : > { %670 = vrcp.f32 %v445_v51 }
 0x27c   : > { %v669_v52 = vpop.eup %668 }
 0x27d   : > { %v448_v53 = vmul.f32 %v669_v52, %v443_v50 }
 0x27f   : > { %v450_v54 = vsub.f32 2.0, %v448_v53 }
 0x280   : > { %v671_v55 = vpop.eup %670 }
 0x281   : > { %v452_v56 = vmul.f32 %v669_v52, %v450_v54  ;;  %v449_v57 = vmul.f32 %v671_v55, %v445_v51 }
 0x283   : > { %v454_v58 = vmul.f32 %v452_v56, %v440_v47  ;;  %v451_v59 = vsub.f32 2.0, %v449_v57 }
 0x285   : > { %456 = vst [vmem:[%s218_s9] sm:$0xff] %v454_v58  ;;  %v453_v60 = vmul.f32 %v671_v55, %v451_v59 }
 0x287   : > { %v455_v61 = vmul.f32 %v453_v60, %v441_v49 }
 0x289   : > { %457 = vst [vmem:[%s218_s9 + $0x8] sm:$0xff] %v455_v61 }
 0x28a   : > { %685 = shalt.err (!%p682_p3)
}
 0x28b   : > { %s686_s23 = scalar_lea.hbm %s868_s14, 256  ;;  %s690_s30 = scalar_lea.hbm %s918_s5, 1024 }
 0x28c   : > { %p687_p4 = scmp.ne.s32.totalorder %s868_s14, %s686_s23  ;;  %p691_p9 = scmp.lt.u32.totalorder %s868_s14, %s918_s5 }
 0x28d   : > { %p692_p10 = scmp.lt.u32.totalorder %s690_s30, %s686_s23  ;;  %p694_p12 = scmp.lt.u32.totalorder %s686_s23, %s868_s14 }
 0x28e   : > { %p688_p7 = pnand %p687_p4, %p807_p5 }
 0x28f   : > { %p693_p11 = por %p692_p10, %p691_p9 }
 0x290   : > { %p689_p8 = pneg %p688_p7 }
 0x291   : > { %p695_p13 = por %p694_p12, %p693_p11 }
 0x293   : > { %p696_p0 = pnand %p695_p13, %p689_p8 }
 0x295   : > { %699 = shalt.err (!%p696_p0)
}
 0x296   : > { %s737_s8 = smov 128   ;;  %s738_s9 = smov 8  }
 0x297   : > { %623 = dma.vmem_to_hbm [thread:$0]  (%p807_p5), %s870_s10, 256, %s868_s14, %s872_s11, %s737_s8, %s737_s8, %s738_s9  }
 0x298 PF: > { %p629_p1 = scmp.ge.s32.totalorder %s734_s21, 2  ;;  %s487_s12 = sand.u32 1, %s722_s18  }
 0x299   : > { %s488_s13 = scalar_lea.sflag [#allocation3], %s487_s12 }
 0x29a   : > { %p626_p2 = pnand %p629_p1, %p811_p6 }
 0x29c   : > { %717 = dma.done.wait (!%p626_p2), %s488_s13, 256  }
 0x29d   : > { %719 = vsyncadd (!%p626_p2), %s488_s13, 4294967040  ;;  %p15_p3 = scmp.ge.s32.totalorder %s794_s24, 6   ;;  %s921_s18 = smov %s726_s19 }
 0x29e   : > { %s922_s19 = smov %s730_s20  ;;  %s923_s20 = smov %s805_s27 }
 0x29f   : > { %s924_s21 = smov %s794_s24  ;;  %17 = sbr.rel (!%p15_p3) target bundleno = 3 (0x3), region = 75 }
 0x2a6   :  { %493 = vsyncpa [#allocation3], 1 }
 0x2a7   :  { %495 = vsyncpa [#allocation3 + $0x1], 1 }

</bundles_post_ra>
